<compile_context>
chip_gen: v7x
topology: tpu7x:2x2x1
jax: 0.10.0
libtpu: 0.0.40
codegen_flags: <defaults>
</compile_context>

<pallas_src>
import jax
import jax.numpy as jnp
from jax.experimental import pallas as pl
from jax.experimental.pallas import tpu as pltpu


def _cls_spatial_kernel(x_ref, wf_ref, wc_ref, bc_ref, cls_ref, sp_ref):
    """Single grid step processes the whole batch as one lane slab.

    x_ref  : (Cin+1, N*HW) input pixels + ones row (bias fold); spatial*batch on lanes
    wf_ref : (F, Cin+1)    backbone 1x1-conv weight with bias column appended
    wc_ref : (L, F)        spatial_classifier 1x1-conv weight (conv layout: out, in)
    bc_ref : (L, 1)        spatial_classifier bias (broadcast over lanes)
    cls_ref: (L, N)        global-max-pooled classification (transposed outside)
    sp_ref : (N, L, HW)    spatial classification map (lane-dense per-image stores)
    """
    x = x_ref[...]        # (Cin+1, N*HW)
    wf = wf_ref[...]      # (F, Cin+1)
    wc = wc_ref[...]      # (L, F)
    bc = bc_ref[...]      # (L, 1)

    # "features" stand-in: pointwise conv (bias folded into the matmul via the
    # ones row / bias column) followed by ReLU activation.
    feat = jnp.maximum(
        jnp.dot(wf, x, preferred_element_type=jnp.float32), 0.0)   # (F, N*HW)

    # dropout_features: F.dropout2d is identity in eval / rate == 0 -> no-op.

    # spatial_classifier: 1x1 conv == (L, F) @ (F, N*HW); single bias add.
    spatial = jnp.dot(wc, feat, preferred_element_type=jnp.float32) + bc  # (L, N*HW)
    spatial = spatial.astype(sp_ref.dtype)

    n_imgs, _, hw = sp_ref.shape   # static block shape; N is tiny -> unrolled
    maxes = []
    for n in range(n_imgs):
        # Static, 128-aligned lane slice of the shared result slab.
        tile = spatial[:, n * hw:(n + 1) * hw]          # (L, HW)
        sp_ref[n] = tile                                # lane-dense unmasked store
        # cl_reduction: global max pool == cross-lane reduce over HW.
        maxes.append(jnp.max(tile, axis=-1, keepdims=True))   # (L, 1)

    # Single 2D classification store after the loop (16 elements total).
    cls_ref[...] = jnp.concatenate(maxes, axis=-1)      # (L, N)


def imagenet_cls_spatial_forward(x_nchw, wf, bf, wc, bc):
    """Forward pass of ImageNetClsSpatialModel (eval mode).

    x_nchw : (N, Cin, H, W) float32
    wf     : (F, Cin)  backbone stand-in 1x1-conv weight (PyTorch conv layout)
    bf     : (F,)      backbone stand-in bias
    wc     : (L, F)    spatial classifier 1x1-conv weight (PyTorch conv layout)
    bc     : (L,)      spatial classifier bias
    Returns (classification (N, L), spatial_cls (N, L, H, W))
    """
    N, Cin, H, W = x_nchw.shape
    F_ = wf.shape[0]
    L = wc.shape[0]
    HW = H * W

    # Fold the batch into lanes: (N, Cin, H, W) -> (Cin, N*HW).
    # This is a wrapper-side transpose of an ~8 KiB tensor (cheap, one-off).
    x_cols = jnp.transpose(x_nchw, (1, 0, 2, 3)).reshape(Cin, N * HW)

    # Fold the backbone bias into the first matmul: ones row on x, bias column
    # on wf (Cin 4->5 still pads to 8 sublanes, so the extra K row is free).
    x_aug = jnp.concatenate([x_cols, jnp.ones((1, N * HW), x_cols.dtype)], axis=0)
    wf_aug = jnp.concatenate([wf, bf[:, None]], axis=1)          # (F, Cin+1)
    bc2 = bc.reshape(L, 1)

    cls_out, sp_out = pl.pallas_call(
        _cls_spatial_kernel,
        out_shape=(
            jax.ShapeDtypeStruct((L, N), jnp.float32),       # classification (pre-transpose)
            jax.ShapeDtypeStruct((N, L, HW), jnp.float32),   # spatial_cls (channels, spatial)
        ),
        grid_spec=pltpu.PrefetchScalarGridSpec(
            num_scalar_prefetch=0,
            grid=(1,),  # whole batch in a single pipelined step (overhead-bound regime)
            in_specs=[
                pl.BlockSpec((Cin + 1, N * HW), lambda i: (0, 0)),   # x (bias-augmented)
                pl.BlockSpec((F_, Cin + 1), lambda i: (0, 0)),       # wf (bias-augmented)
                pl.BlockSpec((L, F_), lambda i: (0, 0)),             # wc
                pl.BlockSpec((L, 1), lambda i: (0, 0)),              # bc
            ],
            out_specs=[
                pl.BlockSpec((L, N), lambda i: (0, 0)),              # classification
                pl.BlockSpec((N, L, HW), lambda i: (0, 0, 0)),       # spatial_cls
            ],
        ),
        compiler_params=pltpu.CompilerParams(
            dimension_semantics=("arbitrary",)),
    )(x_aug, wf_aug, wc, bc2)

    classification = cls_out.T                   # (N, L)  — 16-element transpose
    spatial_cls = sp_out.reshape(N, L, H, W)     # (N, L, H, W) — pure reshape, no transpose
    return classification, spatial_cls


if __name__ == "__main__":
    # Small shapes consistent with the module's forward:
    # batch=2, in_channels=4, spatial=16x16, features_size=32, num labels=8
    N, Cin, H, W = 2, 4, 16, 16
    FEATURES_SIZE = 32
    NUM_LABELS = 8  # len(cl_labels)

    key = jax.random.PRNGKey(0)
    k_x, k_wf, k_bf, k_wc, k_bc = jax.random.split(key, 5)

    x = jax.random.normal(k_x, (N, Cin, H, W), dtype=jnp.float32)

    # Deterministic synthetic parameters (conv layout: out_channels, in_channels).
    wf = jax.random.normal(k_wf, (FEATURES_SIZE, Cin), dtype=jnp.float32) * 0.1
    bf = jax.random.normal(k_bf, (FEATURES_SIZE,), dtype=jnp.float32) * 0.1
    wc = jax.random.normal(k_wc, (NUM_LABELS, FEATURES_SIZE), dtype=jnp.float32) * 0.1
    bc = jax.random.normal(k_bc, (NUM_LABELS,), dtype=jnp.float32) * 0.1

    classification, spatial_cls = jax.jit(imagenet_cls_spatial_forward)(x, wf, bf, wc, bc)
    jax.block_until_ready((classification, spatial_cls))

    # Sanity check against a plain-JAX reference.
    feat_ref = jnp.maximum(
        jnp.einsum("nchw,fc->nfhw", x, wf) + bf[None, :, None, None], 0.0)
    sp_ref = jnp.einsum("nfhw,lf->nlhw", feat_ref, wc) + bc[None, :, None, None]
    cls_ref = jnp.max(sp_ref, axis=(2, 3))
    assert classification.shape == (N, NUM_LABELS)
    assert spatial_cls.shape == (N, NUM_LABELS, H, W)
    assert jnp.allclose(spatial_cls, sp_ref, atol=1e-4, rtol=1e-4)
    assert jnp.allclose(classification, cls_ref, atol=1e-4, rtol=1e-4)

    print("KERNEL_OK")
</pallas_src>

<mosaic_0001>
module attributes {stable_mosaic.version = 11 : i64} {
  func.func @_cls_spatial_kernel(%arg0: i32, %arg1: memref<5x512xf32, #tpu.memory_space<vmem>>, %arg2: memref<32x5xf32, #tpu.memory_space<vmem>>, %arg3: memref<8x32xf32, #tpu.memory_space<vmem>>, %arg4: memref<8x1xf32, #tpu.memory_space<vmem>>, %arg5: memref<8x2xf32, #tpu.memory_space<vmem>>, %arg6: memref<2x8x256xf32, #tpu.memory_space<vmem>>) attributes {dimension_semantics = [#tpu.dimension_semantics<arbitrary>], iteration_bounds = array<i64: 1>, scalar_prefetch = 0 : i64, scratch_operands = 0 : i64, tpu.core_type = #tpu.core_type<tc>, window_params = [{pipeline_mode = #tpu.pipeline_mode<synchronous>, transform_indices = @transform_0, window_bounds = array<i64: 5, 512>}, {pipeline_mode = #tpu.pipeline_mode<synchronous>, transform_indices = @transform_1, window_bounds = array<i64: 32, 5>}, {pipeline_mode = #tpu.pipeline_mode<synchronous>, transform_indices = @transform_2, window_bounds = array<i64: 8, 32>}, {pipeline_mode = #tpu.pipeline_mode<synchronous>, transform_indices = @transform_3, window_bounds = array<i64: 8, 1>}, {pipeline_mode = #tpu.pipeline_mode<synchronous>, transform_indices = @transform_4, window_bounds = array<i64: 8, 2>}, {pipeline_mode = #tpu.pipeline_mode<synchronous>, transform_indices = @transform_5, window_bounds = array<i64: 2, 8, 256>}]} {
    %c0 = arith.constant 0 : index
    %c0_0 = arith.constant 0 : index
    %0 = vector.load %arg1[%c0, %c0_0] : memref<5x512xf32, #tpu.memory_space<vmem>>, vector<5x512xf32>
    %c0_1 = arith.constant 0 : index
    %c0_2 = arith.constant 0 : index
    %1 = vector.load %arg2[%c0_1, %c0_2] : memref<32x5xf32, #tpu.memory_space<vmem>>, vector<32x5xf32>
    %c0_3 = arith.constant 0 : index
    %c0_4 = arith.constant 0 : index
    %2 = vector.load %arg3[%c0_3, %c0_4] : memref<8x32xf32, #tpu.memory_space<vmem>>, vector<8x32xf32>
    %c0_5 = arith.constant 0 : index
    %c0_6 = arith.constant 0 : index
    %3 = vector.load %arg4[%c0_5, %c0_6] : memref<8x1xf32, #tpu.memory_space<vmem>>, vector<8x1xf32>
    %cst = arith.constant dense<0.000000e+00> : vector<32x512xf32>
    %4 = tpu.matmul %1, %0, %cst {dimension_numbers = #tpu.dot_dimension_numbers<[1], [0], [0], [1], [0, 0, 1, 1], [], []>} : vector<32x5xf32>, vector<5x512xf32>, vector<32x512xf32> -> vector<32x512xf32>
    %cst_7 = arith.constant 0.000000e+00 : f32
    %5 = vector.broadcast %cst_7 : f32 to vector<32x512xf32>
    %6 = arith.maximumf %4, %5 : vector<32x512xf32>
    %cst_8 = arith.constant dense<0.000000e+00> : vector<8x512xf32>
    %7 = tpu.matmul %2, %6, %cst_8 {dimension_numbers = #tpu.dot_dimension_numbers<[1], [0], [0], [1], [0, 0, 1, 1], [], []>} : vector<8x32xf32>, vector<32x512xf32>, vector<8x512xf32> -> vector<8x512xf32>
    %8 = vector.broadcast %3 : vector<8x1xf32> to vector<8x512xf32>
    %9 = arith.addf %7, %8 : vector<8x512xf32>
    %10 = vector.extract_strided_slice %9 {offsets = [0, 0], sizes = [8, 256], strides = [1, 1]} : vector<8x512xf32> to vector<8x256xf32>
    %c0_9 = arith.constant 0 : index
    %c0_10 = arith.constant 0 : index
    %c0_11 = arith.constant 0 : index
    %11 = vector.load %arg6[%c0_9, %c0_10, %c0_11] : memref<2x8x256xf32, #tpu.memory_space<vmem>>, vector<1x8x256xf32>
    %12 = vector.shape_cast %11 : vector<1x8x256xf32> to vector<8x256xf32>
    %13 = vector.shape_cast %10 : vector<8x256xf32> to vector<1x8x256xf32>
    tpu.vector_store %arg6[%c0_9, %c0_10, %c0_11], %13 {strides = array<i32>} : memref<2x8x256xf32, #tpu.memory_space<vmem>>, vector<1x8x256xf32>,
    %cst_12 = arith.constant dense<0xFF800000> : vector<8xf32>
    %14 = vector.multi_reduction <maximumf>, %10, %cst_12 [1] : vector<8x256xf32> to vector<8xf32>
    %15 = vector.shape_cast %14 : vector<8xf32> to vector<8x1xf32>
    %16 = vector.extract_strided_slice %9 {offsets = [0, 256], sizes = [8, 256], strides = [1, 1]} : vector<8x512xf32> to vector<8x256xf32>
    %c1 = arith.constant 1 : index
    %c0_13 = arith.constant 0 : index
    %c0_14 = arith.constant 0 : index
    %17 = vector.load %arg6[%c1, %c0_13, %c0_14] : memref<2x8x256xf32, #tpu.memory_space<vmem>>, vector<1x8x256xf32>
    %18 = vector.shape_cast %17 : vector<1x8x256xf32> to vector<8x256xf32>
    %19 = vector.shape_cast %16 : vector<8x256xf32> to vector<1x8x256xf32>
    tpu.vector_store %arg6[%c1, %c0_13, %c0_14], %19 {strides = array<i32>} : memref<2x8x256xf32, #tpu.memory_space<vmem>>, vector<1x8x256xf32>,
    %cst_15 = arith.constant dense<0xFF800000> : vector<8xf32>
    %20 = vector.multi_reduction <maximumf>, %16, %cst_15 [1] : vector<8x256xf32> to vector<8xf32>
    %21 = vector.shape_cast %20 : vector<8xf32> to vector<8x1xf32>
    %22 = tpu.concatenate %15, %21 in 1 : vector<8x1xf32>, vector<8x1xf32> -> vector<8x2xf32>
    %c0_16 = arith.constant 0 : index
    %c0_17 = arith.constant 0 : index
    %23 = vector.load %arg5[%c0_16, %c0_17] : memref<8x2xf32, #tpu.memory_space<vmem>>, vector<8x2xf32>
    tpu.vector_store %arg5[%c0_16, %c0_17], %22 {strides = array<i32>} : memref<8x2xf32, #tpu.memory_space<vmem>>, vector<8x2xf32>,
    return
  }
  func.func @transform_0(%arg0: i32) -> (i32, i32) {
    %c0_i32 = arith.constant 0 : i32
    %c0_i32_0 = arith.constant 0 : i32
    %c0_i32_1 = arith.constant 0 : i32
    return %c0_i32, %c0_i32_0 : i32, i32
  }
  func.func @transform_1(%arg0: i32) -> (i32, i32) {
    %c0_i32 = arith.constant 0 : i32
    %c0_i32_0 = arith.constant 0 : i32
    %c0_i32_1 = arith.constant 0 : i32
    return %c0_i32, %c0_i32_0 : i32, i32
  }
  func.func @transform_2(%arg0: i32) -> (i32, i32) {
    %c0_i32 = arith.constant 0 : i32
    %c0_i32_0 = arith.constant 0 : i32
    %c0_i32_1 = arith.constant 0 : i32
    return %c0_i32, %c0_i32_0 : i32, i32
  }
  func.func @transform_3(%arg0: i32) -> (i32, i32) {
    %c0_i32 = arith.constant 0 : i32
    %c0_i32_0 = arith.constant 0 : i32
    %c0_i32_1 = arith.constant 0 : i32
    return %c0_i32, %c0_i32_0 : i32, i32
  }
  func.func @transform_4(%arg0: i32) -> (i32, i32) {
    %c0_i32 = arith.constant 0 : i32
    %c0_i32_0 = arith.constant 0 : i32
    %c0_i32_1 = arith.constant 0 : i32
    return %c0_i32, %c0_i32_0 : i32, i32
  }
  func.func @transform_5(%arg0: i32) -> (i32, i32, i32) {
    %c0_i32 = arith.constant 0 : i32
    %c0_i32_0 = arith.constant 0 : i32
    %c0_i32_1 = arith.constant 0 : i32
    %c0_i32_2 = arith.constant 0 : i32
    return %c0_i32, %c0_i32_0, %c0_i32_1 : i32, i32, i32
  }
}

</mosaic_0001>

<bundles_post_ra>
// kernel: imagenet_cls_spatial_forward.1
= control target key start
LH: loop header
LB: loop body
LE: loop exit
PB: predicated region body
PF: predicated region fallthrough
CT: control target
= control target key end

     0   :  { %vm42_vm0 = vcmask 1044480   ;;  %vm29_vm1 = vcmask 39936   ;;  %v458_v3 = vmov 0.0   ;;  %v459_v9 = vmov 0   ;;  %s543_s0 = inlined_call_operand.vmem [shape: f32[5,512], index: 0, kind: input, shape index: {}]   ;;  %s544_s1 = inlined_call_operand.vmem [shape: f32[32,5], index: 1, kind: input, shape index: {}]   ;;  %s545_s3 = inlined_call_operand.vmem [shape: f32[8,1], index: 3, kind: input, shape index: {}]   ;;  %s546_s2 = inlined_call_operand.vmem [shape: f32[8,32], index: 2, kind: input, shape index: {}]   ;;  %s547_s5 = inlined_call_operand.vmem [shape: f32[2,8,256], index: 5, kind: output, shape index: {1}]   ;;  %s548_s4 = inlined_call_operand.vmem [shape: f32[8,2], index: 4, kind: output, shape index: {0}]  }
   0x1   :  { %v20_v0 = vld [vmem:[%s543_s0 + $0x8] sm:$0x1f]  ;;  %v22_v1 = vld [vmem:[%s543_s0 + $0x18] sm:$0x1f]  ;;  %v19_v2 = vld [vmem:[%s543_s0] sm:$0x1f]  ;;  %119 = vmatprep.mubr.f32.mxu0 %v458_v3  ;;  %208 = vmatprep.mubr.f32.mxu1 %v458_v3 }
   0x2   :  { %423 = vmatprep.subr.msk.mxu0 %vm42_vm0, %v20_v0  ;;  %429 = vmatprep.subr.msk.mxu1 %vm42_vm0, %v22_v1  ;;  %v21_v4 = vld [vmem:[%s543_s0 + $0x10] sm:$0x1f]  ;;  %v23_v5 = vld [vmem:[%s544_s1] sm:$0xff]  ;;  %v24_v6 = vld [vmem:[%s544_s1 + $0x8] sm:$0xff]  ;;  %vm254_vm2 = vcmask 261120   ;;  %vm411_vm3 = vcmask 7168  }
   0x3   :  { %424 = vmatpush1.msk.msra.mxu0 %vm42_vm0, %v19_v2  ;;  %430 = vmatpush1.msk.msra.mxu1 %vm42_vm0, %v21_v4  ;;  %v25_v7 = vld [vmem:[%s544_s1 + $0x10] sm:$0xff]  ;;  %v26_v8 = vld [vmem:[%s544_s1 + $0x18] sm:$0xff]  ;;  %v28_v10 = vld [vmem:[%s545_s3] sm:$0xff]  ;;  %vm413_vm4 = vcmask 15360  }
   0x4   :  { %425 = vmatmul.mubr.msk.f32.vlgmr.msra.gmra.mrb[0].mxu0 %vm29_vm1, %v23_v5  ;;  %431 = vmatmul.mubr.msk.f32.vlgmr.msra.gmra.mrb[0].mxu1 %vm29_vm1, %v23_v5  ;;  %v27_v51 = vld [vmem:[%s546_s2] sm:$0xff] }
   0x5   :  { %125 = vmatprep.mubr.f32.mxu0 %v458_v3  ;;  %214 = vmatprep.mubr.f32.mxu1 %v458_v3 }
   0x6   :  { %457 = vset.pattern.permute.xlu0 %v459_v9 }
   0x7   :  { %251 = vperm.xlu0 %457, %v28_v10  }
   0x8   :  { %426 = vmatmul.mubr.msk.f32.gmra.mrb[2].mxu0 %vm29_vm1, %v24_v6  ;;  %432 = vmatmul.mubr.msk.f32.gmra.mrb[2].mxu1 %vm29_vm1, %v24_v6 }
   0x9   :  { %131 = vmatprep.mubr.f32.mxu0 %v458_v3  ;;  %220 = vmatprep.mubr.f32.mxu1 %v458_v3 }
   0xc   :  { %427 = vmatmul.mubr.msk.f32.gmra.mrb[4].mxu0 %vm29_vm1, %v25_v7  ;;  %433 = vmatmul.mubr.msk.f32.gmra.mrb[4].mxu1 %vm29_vm1, %v25_v7 }
   0xd   :  { %137 = vmatprep.mubr.f32.mxu0 %v458_v3  ;;  %226 = vmatprep.mubr.f32.mxu1 %v458_v3 }
  0x10   :  { %428 = vmatmul.mubr.msk.f32.gmra.mrb[6].mxu0 %vm29_vm1, %v26_v8  ;;  %434 = vmatmul.mubr.msk.f32.gmra.mrb[6].mxu1 %vm29_vm1, %v26_v8 }
  0x11   :  { %322 = vmatprep.mubr.f32.mxu0 %v458_v3  ;;  %393 = vmatprep.mubr.f32.mxu1 %v458_v3 }
  0x86   :  { %v252_v52 = vpop.permute.xlu0 %251 }
  0xd7   :  { %v121_v11 = vpop.f32.mrb[0].mxu0  ;;  %v210_v12 = vpop.f32.mrb[0].mxu1 }
  0xd8   :  { %v123_v13 = vpop.f32.mrb[1].mxu0  ;;  %v212_v14 = vpop.f32.mrb[1].mxu1  ;;  %v233_v17 = vmax.f32 %v121_v11, 0.0  ;;  %v235_v18 = vmax.f32 %v210_v12, 0.0 }
  0xd9   :  { %v234_v23 = vmax.f32 %v123_v13, 0.0  ;;  %v236_v24 = vmax.f32 %v212_v14, 0.0 }
  0xdb   :  { %v127_v15 = vpop.f32.mrb[2].mxu0  ;;  %v216_v16 = vpop.f32.mrb[2].mxu1 }
  0xdc   :  { %v237_v19 = vmax.f32 %v127_v15, 0.0  ;;  %v239_v20 = vmax.f32 %v216_v16, 0.0  ;;  %v129_v21 = vpop.f32.mrb[3].mxu0  ;;  %v218_v22 = vpop.f32.mrb[3].mxu1 }
  0xdd   :  { %v238_v25 = vmax.f32 %v129_v21, 0.0  ;;  %v240_v26 = vmax.f32 %v218_v22, 0.0 }
  0xde   :  { %v441_v27 = vpack.c.bf16 %v237_v19, %v233_v17  ;;  %v449_v28 = vpack.c.bf16 %v239_v20, %v235_v18 }
  0xdf   :  { %v439_v29 = vpack.c.bf16 %v238_v25, %v234_v23  ;;  %v447_v30 = vpack.c.bf16 %v240_v26, %v236_v24  ;;  %v133_v31 = vpop.f32.mrb[4].mxu0  ;;  %v222_v32 = vpop.f32.mrb[4].mxu1 }
  0xe0   :  { %v135_v33 = vpop.f32.mrb[5].mxu0  ;;  %v224_v34 = vpop.f32.mrb[5].mxu1  ;;  %v241_v37 = vmax.f32 %v133_v31, 0.0  ;;  %v243_v38 = vmax.f32 %v222_v32, 0.0 }
  0xe1   :  { %440 = vmatprep.subr.bf16.mxu0 %v439_v29  ;;  %448 = vmatprep.subr.bf16.mxu1 %v447_v30  ;;  %v242_v43 = vmax.f32 %v135_v33, 0.0  ;;  %v244_v44 = vmax.f32 %v224_v34, 0.0 }
  0xe2   :  { %442 = vmatpush1.bf16.msra.mxu0 %v441_v27  ;;  %450 = vmatpush1.bf16.msra.mxu1 %v449_v28 }
  0xe3   :  { %v139_v35 = vpop.f32.mrb[6].mxu0  ;;  %v228_v36 = vpop.f32.mrb[6].mxu1 }
  0xe4   :  { %v245_v39 = vmax.f32 %v139_v35, 0.0  ;;  %v247_v40 = vmax.f32 %v228_v36, 0.0  ;;  %v141_v41 = vpop.f32.mrb[7].mxu0  ;;  %v230_v42 = vpop.f32.mrb[7].mxu1 }
  0xe5   :  { %v246_v45 = vmax.f32 %v141_v41, 0.0  ;;  %v248_v46 = vmax.f32 %v230_v42, 0.0 }
  0xe6   :  { %v445_v47 = vpack.c.bf16 %v245_v39, %v241_v37  ;;  %v453_v48 = vpack.c.bf16 %v247_v40, %v243_v38 }
  0xe7   :  { %v443_v49 = vpack.c.bf16 %v246_v45, %v242_v43  ;;  %v451_v50 = vpack.c.bf16 %v248_v46, %v244_v44 }
  0xe9   :  { %444 = vmatprep.subr.bf16.mxu0 %v443_v49  ;;  %452 = vmatprep.subr.bf16.mxu1 %v451_v50 }
  0xea   :  { %446 = vmatpush1.bf16.msra.mxu0 %v445_v47  ;;  %454 = vmatpush1.bf16.msra.mxu1 %v453_v48 }
  0xed   :  { %435 = vmatmul.mubr.msk.f32.vlgmr.msra.gmra.mrb[8].mxu0 %vm254_vm2, %v27_v51  ;;  %436 = vmatmul.mubr.msk.f32.vlgmr.msra.gmra.mrb[8].mxu1 %vm254_vm2, %v27_v51 }
 0x1c0   :  { %v324_v53 = vpop.f32.mrb[8].mxu0  ;;  %v395_v54 = vpop.f32.mrb[8].mxu1 }
 0x1c1   :  { %v326_v55 = vpop.f32.mrb[9].mxu0  ;;  %v397_v56 = vpop.f32.mrb[9].mxu1  ;;  %v396_v57 = vadd.f32 %v395_v54, %v252_v52  ;;  %v325_v58 = vadd.f32 %v324_v53, %v252_v52 }
 0x1c2   :  { %v327_v59 = vadd.f32 %v326_v55, %v252_v52  ;;  %v398_v60 = vadd.f32 %v397_v56, %v252_v52 }
 0x1c3   :  { %437 = vst [vmem:[%s547_s5 + $0x10] sm:$0xff] %v396_v57  ;;  %400 = vst [vmem:[%s547_s5] sm:$0xff] %v325_v58 }
 0x1c4   :  { %401 = vst [vmem:[%s547_s5 + $0x8] sm:$0xff] %v327_v59  ;;  %438 = vst [vmem:[%s547_s5 + $0x18] sm:$0xff] %v398_v60  ;;  %v408_v61 = vmax.f32 %v396_v57, %v398_v60  ;;  %v402_v62 = vmax.f32 %v325_v58, %v327_v59 }
 0x1c6   :  { %409 = vmax.xlane.f32.xlu1 %v408_v61  ;;  %403 = vmax.xlane.f32.xlu0 %v402_v62 }
 0x253   :  { %v410_v63 = vpop.xlane.xlu1 %409  ;;  %v404_v0 = vpop.xlane.xlu0 %403 }
 0x254   :  { %v412_v1 = vsel %vm411_vm3, %v404_v0, %v410_v63 }
 0x255   :  { %414 = vst.msk [vmem:[%s548_s4] sm:$0xff] %vm413_vm4, %v412_v1 }

</bundles_post_ra>
